<compile_context>
chip_gen: v5e
topology: v5e:2x2
jax: 0.10.0
libtpu: 0.0.40
codegen_flags: <defaults>
</compile_context>

<pallas_src>
import functools

import jax
import jax.numpy as jnp
from jax.experimental import pallas as pl
from jax.experimental.pallas import tpu as pltpu

_LANE = 128


def _round_up(v, m):
    return -(-v // m) * m


@functools.lru_cache(maxsize=None)
def _vmem_limit_bytes():
    """~85% of physical VMEM (leaves headroom for compiler scratch / double buffers)."""
    default = 64 * 1024 * 1024  # safe on every generation
    try:
        cap = getattr(pltpu.get_tpu_info(), "vmem_capacity_bytes", None)
    except Exception:
        cap = None
    return int(cap * 0.85) if cap else default


def _resident_ok(n_pad, d):
    # 2x for worst-case double buffering; keep the resident operand under half the
    # scoped-VMEM budget so adjacency tiles / accumulators still fit comfortably.
    return 2 * n_pad * d * 2 <= _vmem_limit_bytes() // 2


# ----------------------------------------------------------------------------
# shared in-kernel helpers
# ----------------------------------------------------------------------------
def _masked_log_softmax(z, num_valid):
    """Numerically-stable log_softmax along axis=1 over the first num_valid lanes."""
    col = jax.lax.broadcasted_iota(jnp.int32, z.shape, dimension=1)
    valid = col < num_valid
    neg = jnp.float32(-1e30)
    m = jnp.max(jnp.where(valid, z, neg), axis=1, keepdims=True)
    s = z - m
    e = jnp.exp(jnp.where(valid, s, neg))
    lse = jnp.log(jnp.sum(e, axis=1, keepdims=True))
    return s - lse


def _epilogue(z, activation, num_valid):
    if activation == "relu":
        return jnp.maximum(z, 0.0)
    if activation == "log_softmax":
        return _masked_log_softmax(z, num_valid)
    return z


# ----------------------------------------------------------------------------
# fused small-N kernel: both layers in one pallas_call, everything in VMEM
# ----------------------------------------------------------------------------
def _fused_gcn_kernel(adj_ref, x_ref, w1_ref, b1_ref, w2_ref, b2_ref, o_ref, *,
                      num_classes, agg_first_l1):
    adj = adj_ref[...]                                   # [N, N] bf16
    if agg_first_l1:                                     # (A @ x) @ W1
        ax = jnp.dot(adj, x_ref[...], preferred_element_type=jnp.float32)
        z1 = jnp.dot(ax.astype(w1_ref.dtype), w1_ref[...],
                     preferred_element_type=jnp.float32)
    else:                                                # A @ (x @ W1)
        xw = jnp.dot(x_ref[...], w1_ref[...], preferred_element_type=jnp.float32)
        z1 = jnp.dot(adj, xw.astype(adj.dtype), preferred_element_type=jnp.float32)
    h = jnp.maximum(z1 + b1_ref[...], 0.0).astype(w2_ref.dtype)   # ReLU, stays in VMEM

    hw2 = jnp.dot(h, w2_ref[...], preferred_element_type=jnp.float32)
    z2 = jnp.dot(adj, hw2.astype(adj.dtype), preferred_element_type=jnp.float32) + b2_ref[...]
    o_ref[...] = _masked_log_softmax(z2, num_classes).astype(o_ref.dtype)


def _fused_forward(adj, x, w1, b1, w2, b2, *, num_classes, agg_first_l1):
    n = adj.shape[0]
    cp = w2.shape[1]
    kernel = functools.partial(_fused_gcn_kernel,
                               num_classes=num_classes, agg_first_l1=agg_first_l1)
    vmem = pl.BlockSpec(memory_space=pltpu.MemorySpace.VMEM)
    return pl.pallas_call(
        kernel,
        out_shape=jax.ShapeDtypeStruct((n, cp), jnp.float32),
        in_specs=[vmem] * 6,
        out_specs=vmem,
        compiler_params=pltpu.CompilerParams(vmem_limit_bytes=_vmem_limit_bytes()),
    )(adj, x, w1, b1, w2, b2)


# ----------------------------------------------------------------------------
# tiled large-N kernels
# ----------------------------------------------------------------------------
def _transform_kernel(x_ref, w_ref, o_ref):
    o_ref[...] = jnp.dot(x_ref[...], w_ref[...],
                         preferred_element_type=jnp.float32).astype(o_ref.dtype)


def _dense_transform(x, w, tm):
    """Row-tiled x @ W (small per-node transform), bf16 output."""
    n, din = x.shape
    dout = w.shape[1]
    return pl.pallas_call(
        _transform_kernel,
        out_shape=jax.ShapeDtypeStruct((n, dout), jnp.bfloat16),
        grid_spec=pltpu.PrefetchScalarGridSpec(
            num_scalar_prefetch=0, grid=(n // tm,),
            in_specs=[pl.BlockSpec((tm, din), lambda i: (i, 0)),
                      pl.BlockSpec((din, dout), lambda i: (0, 0))],
            out_specs=pl.BlockSpec((tm, dout), lambda i: (i, 0))),
        compiler_params=pltpu.CompilerParams(
            dimension_semantics=("parallel",),
            vmem_limit_bytes=_vmem_limit_bytes()),
    )(x, w)


def _agg_kernel(adj_ref, r_ref, b_ref, o_ref, acc_ref, *, tk, resident,
                activation, num_valid):
    """out_tile = epilogue( sum_k adj[i,k] @ r[k] + b )   (transform done beforehand)."""
    k = pl.program_id(1)

    @pl.when(k == 0)
    def _():
        acc_ref[...] = jnp.zeros_like(acc_ref)

    if resident:   # rhs kept fully resident in VMEM; slice the current k-chunk
        r = r_ref[pl.ds(pl.multiple_of(k * tk, tk), tk), :]
    else:
        r = r_ref[...]
    acc_ref[...] += jnp.dot(adj_ref[...], r, preferred_element_type=jnp.float32)

    @pl.when(k == pl.num_programs(1) - 1)
    def _():
        z = acc_ref[...] + b_ref[...]
        o_ref[...] = _epilogue(z, activation, num_valid).astype(o_ref.dtype)


def _agg_layer(adj, rhs, b, tm, tk, *, activation, num_valid, out_dtype):
    n = adj.shape[0]
    d = rhs.shape[1]
    resident = _resident_ok(n, d)
    kernel = functools.partial(_agg_kernel, tk=tk, resident=resident,
                               activation=activation, num_valid=num_valid)
    rhs_spec = (pl.BlockSpec((n, d), lambda i, k: (0, 0)) if resident
                else pl.BlockSpec((tk, d), lambda i, k: (k, 0)))
    return pl.pallas_call(
        kernel,
        out_shape=jax.ShapeDtypeStruct((n, d), out_dtype),
        grid_spec=pltpu.PrefetchScalarGridSpec(
            num_scalar_prefetch=0, grid=(n // tm, n // tk),
            in_specs=[pl.BlockSpec((tm, tk), lambda i, k: (i, k)),
                      rhs_spec,
                      pl.BlockSpec((1, d), lambda i, k: (0, 0))],
            out_specs=pl.BlockSpec((tm, d), lambda i, k: (i, 0)),
            scratch_shapes=[pltpu.VMEM((tm, d), jnp.float32)]),
        compiler_params=pltpu.CompilerParams(
            dimension_semantics=("parallel", "arbitrary"),
            vmem_limit_bytes=_vmem_limit_bytes()),
    )(adj, rhs, b)


def _agg_transform_kernel(adj_ref, x_ref, w_ref, b_ref, o_ref, acc_ref, *, tk, resident,
                          activation, num_valid):
    """out_tile = epilogue( (sum_k adj[i,k] @ x[k]) @ W + b )   (aggregate first)."""
    k = pl.program_id(1)

    @pl.when(k == 0)
    def _():
        acc_ref[...] = jnp.zeros_like(acc_ref)

    if resident:
        xs = x_ref[pl.ds(pl.multiple_of(k * tk, tk), tk), :]
    else:
        xs = x_ref[...]
    acc_ref[...] += jnp.dot(adj_ref[...], xs, preferred_element_type=jnp.float32)

    @pl.when(k == pl.num_programs(1) - 1)
    def _():
        z = jnp.dot(acc_ref[...].astype(w_ref.dtype), w_ref[...],
                    preferred_element_type=jnp.float32) + b_ref[...]
        o_ref[...] = _epilogue(z, activation, num_valid).astype(o_ref.dtype)


def _agg_transform_layer(adj, x, w, b, tm, tk, *, activation, num_valid, out_dtype):
    n = adj.shape[0]
    din = x.shape[1]
    dout = w.shape[1]
    resident = _resident_ok(n, din)
    kernel = functools.partial(_agg_transform_kernel, tk=tk, resident=resident,
                               activation=activation, num_valid=num_valid)
    x_spec = (pl.BlockSpec((n, din), lambda i, k: (0, 0)) if resident
              else pl.BlockSpec((tk, din), lambda i, k: (k, 0)))
    return pl.pallas_call(
        kernel,
        out_shape=jax.ShapeDtypeStruct((n, dout), out_dtype),
        grid_spec=pltpu.PrefetchScalarGridSpec(
            num_scalar_prefetch=0, grid=(n // tm, n // tk),
            in_specs=[pl.BlockSpec((tm, tk), lambda i, k: (i, k)),
                      x_spec,
                      pl.BlockSpec((din, dout), lambda i, k: (0, 0)),
                      pl.BlockSpec((1, dout), lambda i, k: (0, 0))],
            out_specs=pl.BlockSpec((tm, dout), lambda i, k: (i, 0)),
            scratch_shapes=[pltpu.VMEM((tm, din), jnp.float32)]),
        compiler_params=pltpu.CompilerParams(
            dimension_semantics=("parallel", "arbitrary"),
            vmem_limit_bytes=_vmem_limit_bytes()),
    )(adj, x, w, b)


# ----------------------------------------------------------------------------
# graph preprocessing (hoisted out of the forward; compute once per graph)
# ----------------------------------------------------------------------------
def normalized_adjacency(edge_index, num_nodes):
    """Dense A_hat = D^{-1/2}(A + I)D^{-1/2} (PyG GCNConv normalization).

    Duplicate directed edges collapse to 1; self-loops are only added where missing
    (matches add_remaining_self_loops for binary adjacency)."""
    src, dst = edge_index[0], edge_index[1]
    a = jnp.zeros((num_nodes, num_nodes), jnp.float32)
    a = a.at[dst, src].set(1.0)                                  # message flows src -> dst
    a = jnp.maximum(a, jnp.eye(num_nodes, dtype=jnp.float32))    # add remaining self loops
    deg = jnp.sum(a, axis=1)
    dinv = jnp.where(deg > 0, jax.lax.rsqrt(deg), 0.0)
    return dinv[:, None] * a * dinv[None, :]


def _padded_nodes(n, *, tile_m, fuse_max_nodes):
    if n <= fuse_max_nodes:
        return _round_up(n, _LANE), True          # fused: lane-dense adjacency
    return _round_up(n, tile_m), False            # tiled: multiple of the row tile only


def _pick_tile_k(n_pad, tile_m, tile_k):
    """Largest power-of-two K tile <= tile_k that divides n_pad (avoids lcm blow-up)."""
    tk = tile_k
    while tk > tile_m and n_pad % tk:
        tk //= 2
    if n_pad % tk:
        tk = tile_m
    return tk


def prepare_graph(adj_hat, *, tile_m=512, tile_k=1024, fuse_max_nodes=2048):
    """Pad + bf16-cast the normalized adjacency ONCE per graph.

    Cache the result and pass it to gcn_net_forward (with the same tile arguments);
    this hoists the O(N^2) pad/cast out of every forward call."""
    del tile_k  # padding only depends on tile_m / fuse_max_nodes
    n = adj_hat.shape[0]
    n_pad, _ = _padded_nodes(n, tile_m=tile_m, fuse_max_nodes=fuse_max_nodes)
    return jnp.pad(adj_hat, ((0, n_pad - n), (0, n_pad - n))).astype(jnp.bfloat16)


# ----------------------------------------------------------------------------
# forward pass (eval mode)
# ----------------------------------------------------------------------------
def gcn_net_forward(x, adj_p, params, *, tile_m=512, tile_k=1024, fuse_max_nodes=2048):
    """log_softmax(conv2(relu(conv1(x)))) with A_hat prepared via prepare_graph()."""
    n, f = x.shape
    hid = params["w1"].shape[1]
    c = params["w2"].shape[1]
    fp = _round_up(f, _LANE)
    hp = _round_up(hid, _LANE)
    cp = _round_up(c, _LANE)
    n_pad, fused = _padded_nodes(n, tile_m=tile_m, fuse_max_nodes=fuse_max_nodes)

    if adj_p.shape[0] != n_pad or adj_p.dtype != jnp.bfloat16:
        # Slow path: caller did not pre-prepare the adjacency. Prefer prepare_graph()
        # so this O(N^2) pad/cast is not re-executed on every forward call.
        assert adj_p.shape[0] <= n_pad, "adjacency larger than expected padded size"
        pad = n_pad - adj_p.shape[0]
        adj_p = jnp.pad(adj_p, ((0, pad), (0, pad))).astype(jnp.bfloat16)

    # zero-pad to lane-dense shapes; bf16 for matmul operands, f32 biases (small arrays).
    x_p = jnp.pad(x, ((0, n_pad - n), (0, fp - f))).astype(jnp.bfloat16)
    w1 = jnp.pad(params["w1"], ((0, fp - f), (0, hp - hid))).astype(jnp.bfloat16)
    b1 = jnp.pad(params["b1"], (0, hp - hid)).reshape(1, hp).astype(jnp.float32)
    w2 = jnp.pad(params["w2"], ((0, hp - hid), (0, cp - c))).astype(jnp.bfloat16)
    b2 = jnp.pad(params["b2"], (0, cp - c)).reshape(1, cp).astype(jnp.float32)

    if fused:
        out_p = _fused_forward(adj_p, x_p, w1, b1, w2, b2,
                               num_classes=c, agg_first_l1=(f <= hid))
    else:
        tk = _pick_tile_k(n_pad, tile_m, tile_k)
        # layer 1: h = relu(A @ x @ W1 + b1), cheapest association chosen statically
        if f <= hid:
            h = _agg_transform_layer(adj_p, x_p, w1, b1, tile_m, tk,
                                     activation="relu", num_valid=hid,
                                     out_dtype=jnp.bfloat16)
        else:
            xw1 = _dense_transform(x_p, w1, tile_m)
            h = _agg_layer(adj_p, xw1, b1, tile_m, tk,
                           activation="relu", num_valid=hid, out_dtype=jnp.bfloat16)
        # layer 2: out = log_softmax(A @ h @ W2 + b2)
        if c <= hid:
            hw2 = _dense_transform(h, w2, tile_m)
            out_p = _agg_layer(adj_p, hw2, b2, tile_m, tk,
                               activation="log_softmax", num_valid=c,
                               out_dtype=jnp.float32)
        else:
            out_p = _agg_transform_layer(adj_p, h, w2, b2, tile_m, tk,
                                         activation="log_softmax", num_valid=c,
                                         out_dtype=jnp.float32)
    return out_p[:n, :c]


# ----------------------------------------------------------------------------
# parameters / reference
# ----------------------------------------------------------------------------
def init_params(key, num_features, hidden, num_classes):
    k1, k2 = jax.random.split(key)

    def glorot(k, fan_in, fan_out):   # GCNConv.reset_parameters(): glorot W, zero bias
        lim = jnp.sqrt(6.0 / (fan_in + fan_out))
        return jax.random.uniform(k, (fan_in, fan_out), jnp.float32, -lim, lim)

    return {
        "w1": glorot(k1, num_features, hidden),
        "b1": jnp.zeros((hidden,), jnp.float32),
        "w2": glorot(k2, hidden, num_classes),
        "b2": jnp.zeros((num_classes,), jnp.float32),
    }


def _reference_forward(x, adj, params):
    h = jnp.maximum(adj @ x @ params["w1"] + params["b1"][None, :], 0.0)
    z = adj @ h @ params["w2"] + params["b2"][None, :]
    return jax.nn.log_softmax(z, axis=1)


# ----------------------------------------------------------------------------
# demo / self-test
# ----------------------------------------------------------------------------
if __name__ == "__main__":
    def make_ring_edge_index(n):
        src = jnp.arange(n, dtype=jnp.int32)
        dst = (src + 1) % n
        return jnp.stack([jnp.concatenate([src, dst]),
                          jnp.concatenate([dst, src])], axis=0)

    key = jax.random.PRNGKey(0)
    HID, C = 32, 4

    # --- small graph: fused single-kernel path ---------------------------------
    N1, F1 = 16, 8
    k1, k2, key = jax.random.split(key, 3)
    x1 = jax.random.normal(k1, (N1, F1), jnp.float32)
    p1 = init_params(k2, F1, HID, C)
    adj1 = normalized_adjacency(make_ring_edge_index(N1), N1)
    adj1_p = prepare_graph(adj1)                        # hoisted / cached per graph
    fwd_fused = jax.jit(gcn_net_forward)
    out1 = jax.block_until_ready(fwd_fused(x1, adj1_p, p1))
    ref1 = _reference_forward(x1, adj1, p1)
    assert out1.shape == (N1, C)
    assert bool(jnp.allclose(jnp.sum(jnp.exp(out1), axis=1), 1.0, atol=1e-4))
    assert bool(jnp.max(jnp.abs(out1 - ref1)) < 0.15)

    # --- tiled grid path (forced at small N via fuse_max_nodes=0; same kernels
    #     the 512/1024 defaults use on big graphs, resident-rhs variant) --------
    N2, F2 = 600, 8
    TM2, TK2 = 256, 512
    k3, k4, key = jax.random.split(key, 3)
    x2 = jax.random.normal(k3, (N2, F2), jnp.float32)
    p2 = init_params(k4, F2, HID, C)
    adj2 = normalized_adjacency(make_ring_edge_index(N2), N2)
    adj2_p = prepare_graph(adj2, tile_m=TM2, tile_k=TK2, fuse_max_nodes=0)
    fwd_tiled = jax.jit(functools.partial(gcn_net_forward,
                                          tile_m=TM2, tile_k=TK2, fuse_max_nodes=0))
    out2 = jax.block_until_ready(fwd_tiled(x2, adj2_p, p2))
    ref2 = _reference_forward(x2, adj2, p2)
    assert out2.shape == (N2, C)
    assert bool(jnp.allclose(jnp.sum(jnp.exp(out2), axis=1), 1.0, atol=1e-4))
    assert bool(jnp.max(jnp.abs(out2 - ref2)) < 0.15)

    print("KERNEL_OK")
</pallas_src>

<mosaic_0001>
module attributes {stable_mosaic.version = 11 : i64} {
  func.func @_fused_gcn_kernel(%arg0: memref<128x128xbf16, #tpu.memory_space<vmem>>, %arg1: memref<128x128xbf16, #tpu.memory_space<vmem>>, %arg2: memref<128x128xbf16, #tpu.memory_space<vmem>>, %arg3: memref<1x128xf32, #tpu.memory_space<vmem>>, %arg4: memref<128x128xbf16, #tpu.memory_space<vmem>>, %arg5: memref<1x128xf32, #tpu.memory_space<vmem>>, %arg6: memref<128x128xf32, #tpu.memory_space<vmem>>) attributes {dimension_semantics = [], scalar_prefetch = 0 : i64, scratch_operands = 0 : i64, tpu.core_type = #tpu.core_type<tc>} {
    %c0 = arith.constant 0 : index
    %c0_0 = arith.constant 0 : index
    %0 = vector.load %arg0[%c0, %c0_0] : memref<128x128xbf16, #tpu.memory_space<vmem>>, vector<128x128xbf16>
    %c0_1 = arith.constant 0 : index
    %c0_2 = arith.constant 0 : index
    %1 = vector.load %arg1[%c0_1, %c0_2] : memref<128x128xbf16, #tpu.memory_space<vmem>>, vector<128x128xbf16>
    %cst = arith.constant dense<0.000000e+00> : vector<128x128xf32>
    %2 = tpu.matmul %0, %1, %cst {dimension_numbers = #tpu.dot_dimension_numbers<[1], [0], [0], [1], [0, 0, 1, 1], [], []>} : vector<128x128xbf16>, vector<128x128xbf16>, vector<128x128xf32> -> vector<128x128xf32>
    %3 = arith.truncf %2 : vector<128x128xf32> to vector<128x128xbf16>
    %c0_3 = arith.constant 0 : index
    %c0_4 = arith.constant 0 : index
    %4 = vector.load %arg2[%c0_3, %c0_4] : memref<128x128xbf16, #tpu.memory_space<vmem>>, vector<128x128xbf16>
    %cst_5 = arith.constant dense<0.000000e+00> : vector<128x128xf32>
    %5 = tpu.matmul %3, %4, %cst_5 {dimension_numbers = #tpu.dot_dimension_numbers<[1], [0], [0], [1], [0, 0, 1, 1], [], []>} : vector<128x128xbf16>, vector<128x128xbf16>, vector<128x128xf32> -> vector<128x128xf32>
    %c0_6 = arith.constant 0 : index
    %c0_7 = arith.constant 0 : index
    %6 = vector.load %arg3[%c0_6, %c0_7] : memref<1x128xf32, #tpu.memory_space<vmem>>, vector<1x128xf32>
    %7 = vector.broadcast %6 : vector<1x128xf32> to vector<128x128xf32>
    %8 = arith.addf %5, %7 : vector<128x128xf32>
    %cst_8 = arith.constant 0.000000e+00 : f32
    %9 = vector.broadcast %cst_8 : f32 to vector<128x128xf32>
    %10 = arith.maximumf %8, %9 : vector<128x128xf32>
    %11 = arith.truncf %10 : vector<128x128xf32> to vector<128x128xbf16>
    %c0_9 = arith.constant 0 : index
    %c0_10 = arith.constant 0 : index
    %12 = vector.load %arg4[%c0_9, %c0_10] : memref<128x128xbf16, #tpu.memory_space<vmem>>, vector<128x128xbf16>
    %cst_11 = arith.constant dense<0.000000e+00> : vector<128x128xf32>
    %13 = tpu.matmul %11, %12, %cst_11 {dimension_numbers = #tpu.dot_dimension_numbers<[1], [0], [0], [1], [0, 0, 1, 1], [], []>} : vector<128x128xbf16>, vector<128x128xbf16>, vector<128x128xf32> -> vector<128x128xf32>
    %14 = arith.truncf %13 : vector<128x128xf32> to vector<128x128xbf16>
    %cst_12 = arith.constant dense<0.000000e+00> : vector<128x128xf32>
    %15 = tpu.matmul %0, %14, %cst_12 {dimension_numbers = #tpu.dot_dimension_numbers<[1], [0], [0], [1], [0, 0, 1, 1], [], []>} : vector<128x128xbf16>, vector<128x128xbf16>, vector<128x128xf32> -> vector<128x128xf32>
    %c0_13 = arith.constant 0 : index
    %c0_14 = arith.constant 0 : index
    %16 = vector.load %arg5[%c0_13, %c0_14] : memref<1x128xf32, #tpu.memory_space<vmem>>, vector<1x128xf32>
    %17 = vector.broadcast %16 : vector<1x128xf32> to vector<128x128xf32>
    %18 = arith.addf %15, %17 : vector<128x128xf32>
    %19 = tpu.iota {dimensions = array<i32: 1>} : vector<128x128xi32>
    %c4_i32 = arith.constant 4 : i32
    %20 = vector.broadcast %c4_i32 : i32 to vector<128x128xi32>
    %21 = arith.cmpi slt, %19, %20 : vector<128x128xi32>
    %cst_15 = arith.constant -1.000000e+30 : f32
    %22 = vector.broadcast %cst_15 : f32 to vector<128x128xf32>
    %23 = arith.select %21, %18, %22 : vector<128x128xi1>, vector<128x128xf32>
    %cst_16 = arith.constant dense<0xFF800000> : vector<128xf32>
    %24 = vector.multi_reduction <maximumf>, %23, %cst_16 [1] : vector<128x128xf32> to vector<128xf32>
    %25 = vector.shape_cast %24 : vector<128xf32> to vector<128x1xf32>
    %26 = vector.broadcast %25 : vector<128x1xf32> to vector<128x128xf32>
    %27 = arith.subf %18, %26 : vector<128x128xf32>
    %cst_17 = arith.constant -1.000000e+30 : f32
    %28 = vector.broadcast %cst_17 : f32 to vector<128x128xf32>
    %29 = arith.select %21, %27, %28 : vector<128x128xi1>, vector<128x128xf32>
    %30 = math.exp %29 : vector<128x128xf32>
    %cst_18 = arith.constant dense<0.000000e+00> : vector<128xf32>
    %31 = vector.multi_reduction <add>, %30, %cst_18 [1] : vector<128x128xf32> to vector<128xf32>
    %32 = vector.shape_cast %31 : vector<128xf32> to vector<128x1xf32>
    %33 = math.log %32 : vector<128x1xf32>
    %34 = vector.broadcast %33 : vector<128x1xf32> to vector<128x128xf32>
    %35 = arith.subf %27, %34 : vector<128x128xf32>
    %c0_19 = arith.constant 0 : index
    %c0_20 = arith.constant 0 : index
    %36 = vector.load %arg6[%c0_19, %c0_20] : memref<128x128xf32, #tpu.memory_space<vmem>>, vector<128x128xf32>
    tpu.vector_store %arg6[%c0_19, %c0_20], %35 {strides = array<i32>} : memref<128x128xf32, #tpu.memory_space<vmem>>, vector<128x128xf32>,
    return
  }
}

</mosaic_0001>

<bundles_post_ra>
// kernel: gcn_net_forward.1
= control target key start
LH: loop header
LB: loop body
LE: loop exit
PB: predicated region body
PF: predicated region fallthrough
CT: control target
= control target key end

     0   :  { %s1390_s1 = inlined_call_operand.vmem [shape: bf16[128,128], index: 1, kind: input, shape index: {}]   ;;  %s1391_s0 = inlined_call_operand.vmem [shape: bf16[128,128], index: 0, kind: input, shape index: {}]   ;;  %s1392_s2 = inlined_call_operand.vmem [shape: bf16[128,128], index: 2, kind: input, shape index: {}]   ;;  %s1393_s3 = inlined_call_operand.vmem [shape: f32[1,128], index: 3, kind: input, shape index: {}]   ;;  %s1394_s4 = inlined_call_operand.vmem [shape: bf16[128,128], index: 4, kind: input, shape index: {}]   ;;  %s1395_s5 = inlined_call_operand.vmem [shape: f32[1,128], index: 5, kind: input, shape index: {}]   ;;  %s1396_s6 = inlined_call_operand.vmem [shape: f32[128,128], index: 6, kind: output, shape index: {}]  }
   0x1   :  { %v881_v0 = vld [vmem:[%s1390_s1 + $0x38] sm:$0xff]  ;;  %v880_v1 = vld [vmem:[%s1390_s1 + $0x30] sm:$0xff]  ;;  %v879_v2 = vld [vmem:[%s1390_s1 + $0x28] sm:$0xff] }
   0x2   :  { %151 = vmatpush.bf16.msra.mxu0 %v881_v0  ;;  %v878_v3 = vld [vmem:[%s1390_s1 + $0x20] sm:$0xff]  ;;  %v877_v4 = vld [vmem:[%s1390_s1 + $0x18] sm:$0xff]  ;;  %v876_v5 = vld [vmem:[%s1390_s1 + $0x10] sm:$0xff] }
   0x3   :  { %v875_v6 = vld [vmem:[%s1390_s1 + $0x8] sm:$0xff]  ;;  %v874_v7 = vld [vmem:[%s1390_s1] sm:$0xff]  ;;  %v1038_v10 = vld [vmem:[%s1391_s0 + $0x10] sm:$0xff] }
   0x4   :  { %v1026_v8 = vld [vmem:[%s1391_s0] sm:$0xff]  ;;  %v1032_v9 = vld [vmem:[%s1391_s0 + $0x8] sm:$0xff]  ;;  %v1044_v11 = vld [vmem:[%s1391_s0 + $0x18] sm:$0xff] }
   0x5   :  { %v1050_v12 = vld [vmem:[%s1391_s0 + $0x20] sm:$0xff]  ;;  %v889_v13 = vld [vmem:[%s1392_s2 + $0x38] sm:$0xff]  ;;  %v888_v14 = vld [vmem:[%s1392_s2 + $0x30] sm:$0xff] }
   0x6   :  { %152 = vmatpush.bf16.msra.mxu0 %v880_v1  ;;  %276 = vmatpush.bf16.msra.mxu1 %v889_v13  ;;  %v1062_v15 = vld [vmem:[%s1391_s0 + $0x28] sm:$0xff]  ;;  %v886_v17 = vld [vmem:[%s1392_s2 + $0x20] sm:$0xff]  ;;  %v885_v18 = vld [vmem:[%s1392_s2 + $0x18] sm:$0xff] }
   0x7   :  { %v887_v16 = vld [vmem:[%s1392_s2 + $0x28] sm:$0xff]  ;;  %v884_v19 = vld [vmem:[%s1392_s2 + $0x10] sm:$0xff]  ;;  %v882_v22 = vld [vmem:[%s1392_s2] sm:$0xff] }
   0x8   :  { %v1080_v20 = vld [vmem:[%s1391_s0 + $0x30] sm:$0xff]  ;;  %v883_v21 = vld [vmem:[%s1392_s2 + $0x8] sm:$0xff]  ;;  %v1092_v23 = vld [vmem:[%s1391_s0 + $0x38] sm:$0xff] }
   0x9   :  { %v897_v40 = vld [vmem:[%s1394_s4 + $0x38] sm:$0xff]  ;;  %v896_v43 = vld [vmem:[%s1394_s4 + $0x30] sm:$0xff]  ;;  %v895_v44 = vld [vmem:[%s1394_s4 + $0x28] sm:$0xff] }
   0xa   :  { %153 = vmatpush.bf16.msra.mxu0 %v879_v2  ;;  %277 = vmatpush.bf16.msra.mxu1 %v888_v14  ;;  %v894_v46 = vld [vmem:[%s1394_s4 + $0x20] sm:$0xff]  ;;  %v893_v47 = vld [vmem:[%s1394_s4 + $0x18] sm:$0xff]  ;;  %v892_v50 = vld [vmem:[%s1394_s4 + $0x10] sm:$0xff] }
   0xb   :  { %413 = vmatpush.bf16.msra.mxu2 %v897_v40  ;;  %v891_v51 = vld [vmem:[%s1394_s4 + $0x8] sm:$0xff]  ;;  %v890_v53 = vld [vmem:[%s1394_s4] sm:$0xff] }
   0xc   :  { %v898_v57 = vld [vmem:[%s1393_s3] ss:$0 sm:$0xff] }
   0xe   :  { %154 = vmatpush.bf16.msra.mxu0 %v878_v3  ;;  %278 = vmatpush.bf16.msra.mxu1 %v887_v16 }
   0xf   :  { %414 = vmatpush.bf16.msra.mxu2 %v896_v43 }
  0x12   :  { %155 = vmatpush.bf16.msra.mxu0 %v877_v4  ;;  %279 = vmatpush.bf16.msra.mxu1 %v886_v17 }
  0x13   :  { %415 = vmatpush.bf16.msra.mxu2 %v895_v44 }
  0x16   :  { %156 = vmatpush.bf16.msra.mxu0 %v876_v5  ;;  %280 = vmatpush.bf16.msra.mxu1 %v885_v18 }
  0x17   :  { %416 = vmatpush.bf16.msra.mxu2 %v894_v46 }
  0x1a   :  { %157 = vmatpush.bf16.msra.mxu0 %v875_v6  ;;  %281 = vmatpush.bf16.msra.mxu1 %v884_v19 }
  0x1b   :  { %417 = vmatpush.bf16.msra.mxu2 %v893_v47 }
  0x1e   :  { %158 = vmatpush.bf16.msra.mxu0 %v874_v7  ;;  %282 = vmatpush.bf16.msra.mxu1 %v883_v21 }
  0x1f   :  { %418 = vmatpush.bf16.msra.mxu2 %v892_v50 }
  0x21   :  { %159 = vmatmul.bf16.vlgmr.msra.gmra.mxu0 %v1026_v8 }
  0x22   :  { %283 = vmatpush.bf16.msra.mxu1 %v882_v22 }
  0x23   :  { %419 = vmatpush.bf16.msra.mxu2 %v891_v51 }
  0x27   :  { %420 = vmatpush.bf16.msra.mxu2 %v890_v53 }
  0x31   :  { %164 = vmatmul.bf16.gmra.mxu0 %v1032_v9 }
  0x41   :  { %169 = vmatmul.bf16.gmra.mxu0 %v1038_v10 }
  0x51   :  { %174 = vmatmul.bf16.gmra.mxu0 %v1044_v11 }
  0x61   :  { %179 = vmatmul.bf16.gmra.mxu0 %v1050_v12 }
  0x71   :  { %184 = vmatmul.bf16.gmra.mxu0 %v1062_v15 }
  0x81   :  { %189 = vmatmul.bf16.gmra.mxu0 %v1080_v20 }
  0x91   :  { %194 = vmatmul.bf16.gmra.mxu0 %v1092_v23 }
  0x9e   :  { %v160_v24 = vpop.f32.mrf.mxu0 }
  0xa6   :  { %v162_v25 = vpop.f32.mrf.mxu0 }
  0xa7   :  { %v200_v26 = vpack.c.bf16 %v162_v25, %v160_v24 }
  0xa9   :  { %284 = vmatmul.bf16.vlgmr.msra.gmra.mxu1 %v200_v26 }
  0xae   :  { %v165_v27 = vpop.f32.mrf.mxu0 }
  0xb6   :  { %v167_v28 = vpop.f32.mrf.mxu0 }
  0xb7   :  { %v201_v29 = vpack.c.bf16 %v167_v28, %v165_v27 }
  0xb9   :  { %289 = vmatmul.bf16.gmra.mxu1 %v201_v29 }
  0xbe   :  { %v170_v30 = vpop.f32.mrf.mxu0 }
  0xc6   :  { %v172_v31 = vpop.f32.mrf.mxu0 }
  0xc7   :  { %v202_v32 = vpack.c.bf16 %v172_v31, %v170_v30 }
  0xc9   :  { %294 = vmatmul.bf16.gmra.mxu1 %v202_v32 }
  0xce   :  { %v175_v33 = vpop.f32.mrf.mxu0 }
  0xd6   :  { %v177_v34 = vpop.f32.mrf.mxu0 }
  0xd7   :  { %v203_v35 = vpack.c.bf16 %v177_v34, %v175_v33 }
  0xd9   :  { %299 = vmatmul.bf16.gmra.mxu1 %v203_v35 }
  0xde   :  { %v180_v36 = vpop.f32.mrf.mxu0 }
  0xe6   :  { %v182_v37 = vpop.f32.mrf.mxu0 }
  0xe7   :  { %v204_v38 = vpack.c.bf16 %v182_v37, %v180_v36 }
  0xe9   :  { %304 = vmatmul.bf16.gmra.mxu1 %v204_v38 }
  0xee   :  { %v185_v39 = vpop.f32.mrf.mxu0 }
  0xf6   :  { %v187_v41 = vpop.f32.mrf.mxu0 }
  0xf7   :  { %v205_v42 = vpack.c.bf16 %v187_v41, %v185_v39 }
  0xf9   :  { %309 = vmatmul.bf16.gmra.mxu1 %v205_v42 }
  0xfe   :  { %v190_v45 = vpop.f32.mrf.mxu0 }
 0x106   :  { %v192_v48 = vpop.f32.mrf.mxu0 }
 0x107   :  { %v206_v49 = vpack.c.bf16 %v192_v48, %v190_v45 }
 0x109   :  { %314 = vmatmul.bf16.gmra.mxu1 %v206_v49 }
 0x10e   :  { %v195_v52 = vpop.f32.mrf.mxu0 }
 0x116   :  { %v197_v54 = vpop.f32.mrf.mxu0 }
 0x117   :  { %v207_v55 = vpack.c.bf16 %v197_v54, %v195_v52 }
 0x119   :  { %319 = vmatmul.bf16.gmra.mxu1 %v207_v55 }
 0x126   :  { %v285_v56 = vpop.f32.mrf.mxu1 }
 0x127   :  { %v286_v58 = vadd.f32 %v898_v57, %v285_v56 }
 0x129   :  { %v325_v61 = vmax.f32 %v286_v58, 0.0 }
 0x12e   :  { %v287_v59 = vpop.f32.mrf.mxu1 }
 0x12f   :  { %v288_v60 = vadd.f32 %v898_v57, %v287_v59 }
 0x131   :  { %v326_v62 = vmax.f32 %v288_v60, 0.0 }
 0x133   :  { %v341_v63 = vpack.c.bf16 %v326_v62, %v325_v61 }
 0x135   :  { %421 = vmatmul.bf16.vlgmr.msra.gmra.mxu2 %v341_v63 }
 0x136   :  { %v290_v0 = vpop.f32.mrf.mxu1 }
 0x137   :  { %v291_v1 = vadd.f32 %v898_v57, %v290_v0 }
 0x139   :  { %v327_v4 = vmax.f32 %v291_v1, 0.0 }
 0x13e   :  { %v292_v2 = vpop.f32.mrf.mxu1 }
 0x13f   :  { %v293_v3 = vadd.f32 %v898_v57, %v292_v2 }
 0x141   :  { %v328_v5 = vmax.f32 %v293_v3, 0.0 }
 0x143   :  { %v342_v6 = vpack.c.bf16 %v328_v5, %v327_v4 }
 0x145   :  { %426 = vmatmul.bf16.gmra.mxu2 %v342_v6 }
 0x146   :  { %v295_v7 = vpop.f32.mrf.mxu1 }
 0x147   :  { %v296_v13 = vadd.f32 %v898_v57, %v295_v7 }
 0x149   :  { %v329_v17 = vmax.f32 %v296_v13, 0.0 }
 0x14e   :  { %v297_v14 = vpop.f32.mrf.mxu1 }
 0x14f   :  { %v298_v16 = vadd.f32 %v898_v57, %v297_v14 }
 0x151   :  { %v330_v18 = vmax.f32 %v298_v16, 0.0 }
 0x153   :  { %v343_v19 = vpack.c.bf16 %v330_v18, %v329_v17 }
 0x155   :  { %431 = vmatmul.bf16.gmra.mxu2 %v343_v19 }
 0x156   :  { %v300_v21 = vpop.f32.mrf.mxu1 }
 0x157   :  { %v301_v22 = vadd.f32 %v898_v57, %v300_v21 }
 0x159   :  { %v331_v26 = vmax.f32 %v301_v22, 0.0 }
 0x15e   :  { %v302_v24 = vpop.f32.mrf.mxu1 }
 0x15f   :  { %v303_v25 = vadd.f32 %v898_v57, %v302_v24 }
 0x161   :  { %v332_v27 = vmax.f32 %v303_v25, 0.0  ;;  %v523_v25 = vlaneseq }
 0x163   :  { %v344_v28 = vpack.c.bf16 %v332_v27, %v331_v26  ;;  %v1130_v26 = vand.u32 127, %v523_v25 }
 0x165   :  { %436 = vmatmul.bf16.gmra.mxu2 %v344_v28  ;;  %vm525_vm0 = vcmp.lt.s32.totalorder %v1130_v26, 4 }
 0x166   :  { %v305_v29 = vpop.f32.mrf.mxu1 }
 0x167   :  { %v306_v30 = vadd.f32 %v898_v57, %v305_v29 }
 0x169   :  { %v333_v33 = vmax.f32 %v306_v30, 0.0 }
 0x16e   :  { %v307_v31 = vpop.f32.mrf.mxu1 }
 0x16f   :  { %v308_v32 = vadd.f32 %v898_v57, %v307_v31 }
 0x171   :  { %v334_v34 = vmax.f32 %v308_v32, 0.0 }
 0x173   :  { %v345_v35 = vpack.c.bf16 %v334_v34, %v333_v33 }
 0x175   :  { %441 = vmatmul.bf16.gmra.mxu2 %v345_v35 }
 0x176   :  { %v310_v36 = vpop.f32.mrf.mxu1 }
 0x177   :  { %v311_v37 = vadd.f32 %v898_v57, %v310_v36 }
 0x179   :  { %v335_v40 = vmax.f32 %v311_v37, 0.0 }
 0x17e   :  { %v312_v38 = vpop.f32.mrf.mxu1 }
 0x17f   :  { %v313_v39 = vadd.f32 %v898_v57, %v312_v38 }
 0x181   :  { %v336_v41 = vmax.f32 %v313_v39, 0.0 }
 0x183   :  { %v346_v42 = vpack.c.bf16 %v336_v41, %v335_v40 }
 0x185   :  { %446 = vmatmul.bf16.gmra.mxu2 %v346_v42 }
 0x186   :  { %v315_v43 = vpop.f32.mrf.mxu1 }
 0x187   :  { %v316_v44 = vadd.f32 %v898_v57, %v315_v43 }
 0x189   :  { %v337_v47 = vmax.f32 %v316_v44, 0.0 }
 0x18e   :  { %v317_v45 = vpop.f32.mrf.mxu1 }
 0x18f   :  { %v318_v46 = vadd.f32 %v898_v57, %v317_v45 }
 0x191   :  { %v338_v48 = vmax.f32 %v318_v46, 0.0 }
 0x193   :  { %v347_v49 = vpack.c.bf16 %v338_v48, %v337_v47 }
 0x195   :  { %451 = vmatmul.bf16.gmra.mxu2 %v347_v49 }
 0x196   :  { %v320_v50 = vpop.f32.mrf.mxu1 }
 0x197   :  { %v321_v51 = vadd.f32 %v898_v57, %v320_v50 }
 0x199   :  { %v339_v54 = vmax.f32 %v321_v51, 0.0 }
 0x19e   :  { %v322_v52 = vpop.f32.mrf.mxu1 }
 0x19f   :  { %v323_v53 = vadd.f32 %v898_v57, %v322_v52 }
 0x1a1   :  { %v340_v55 = vmax.f32 %v323_v53, 0.0 }
 0x1a3   :  { %v348_v56 = vpack.c.bf16 %v340_v55, %v339_v54 }
 0x1a5   :  { %456 = vmatmul.bf16.gmra.mxu2 %v348_v56 }
 0x1b8   :  { %v422_v58 = vpop.f32.mrf.mxu2 }
 0x1c0   :  { %v424_v59 = vpop.f32.mrf.mxu2 }
 0x1c1   :  { %v462_v60 = vpack.c.bf16 %v424_v59, %v422_v58 }
 0x1c8   :  { %v427_v61 = vpop.f32.mrf.mxu2 }
 0x1d0   :  { %v429_v62 = vpop.f32.mrf.mxu2 }
 0x1d1   :  { %v463_v63 = vpack.c.bf16 %v429_v62, %v427_v61 }
 0x1d8   :  { %v432_v0 = vpop.f32.mrf.mxu2 }
 0x1e0   :  { %v434_v1 = vpop.f32.mrf.mxu2 }
 0x1e1   :  { %v464_v2 = vpack.c.bf16 %v434_v1, %v432_v0 }
 0x1e8   :  { %v437_v3 = vpop.f32.mrf.mxu2 }
 0x1f0   :  { %v439_v4 = vpop.f32.mrf.mxu2 }
 0x1f1   :  { %v465_v5 = vpack.c.bf16 %v439_v4, %v437_v3 }
 0x1f8   :  { %v442_v6 = vpop.f32.mrf.mxu2 }
 0x200   :  { %v444_v7 = vpop.f32.mrf.mxu2 }
 0x201   :  { %v466_v24 = vpack.c.bf16 %v444_v7, %v442_v6 }
 0x208   :  { %v447_v13 = vpop.f32.mrf.mxu2 }
 0x210   :  { %v449_v57 = vpop.f32.mrf.mxu2 }
 0x211   :  { %v467_v22 = vpack.c.bf16 %v449_v57, %v447_v13 }
 0x218   :  { %v452_v14 = vpop.f32.mrf.mxu2 }
 0x220   :  { %v454_v16 = vpop.f32.mrf.mxu2 }
 0x221   :  { %v468_v21 = vpack.c.bf16 %v454_v16, %v452_v14 }
 0x228   :  { %v457_v17 = vpop.f32.mrf.mxu2 }
 0x230   :  { %v459_v18 = vpop.f32.mrf.mxu2 }
 0x231   :  { %v469_v19 = vpack.c.bf16 %v459_v18, %v457_v17 }
 0x233   :  { %474 = vmatpush.bf16.msra.mxu3 %v469_v19 }
 0x237   :  { %475 = vmatpush.bf16.msra.mxu3 %v468_v21 }
 0x23b   :  { %476 = vmatpush.bf16.msra.mxu3 %v467_v22 }
 0x23f   :  { %477 = vmatpush.bf16.msra.mxu3 %v466_v24 }
 0x243   :  { %478 = vmatpush.bf16.msra.mxu3 %v465_v5 }
 0x247   :  { %479 = vmatpush.bf16.msra.mxu3 %v464_v2 }
 0x24b   :  { %480 = vmatpush.bf16.msra.mxu3 %v463_v63 }
 0x24f   :  { %481 = vmatpush.bf16.msra.mxu3 %v462_v60 }
 0x252   :  { %482 = vmatmul.bf16.vlgmr.msra.gmra.mxu3 %v1026_v8  ;;  %v1135_v8 = vld [vmem:[%s1395_s5] ss:$0 sm:$0xff] }
 0x262   :  { %487 = vmatmul.bf16.gmra.mxu3 %v1032_v9 }
 0x272   :  { %492 = vmatmul.bf16.gmra.mxu3 %v1038_v10 }
 0x282   :  { %497 = vmatmul.bf16.gmra.mxu3 %v1044_v11 }
 0x292   :  { %502 = vmatmul.bf16.gmra.mxu3 %v1050_v12 }
 0x2a2   :  { %507 = vmatmul.bf16.gmra.mxu3 %v1062_v15 }
 0x2b2   :  { %512 = vmatmul.bf16.gmra.mxu3 %v1080_v20 }
 0x2c2   :  { %517 = vmatmul.bf16.gmra.mxu3 %v1092_v23 }
 0x2d5   :  { %v483_v9 = vpop.f32.mrf.mxu3 }
 0x2d6   :  { %v484_v10 = vadd.f32 %v1135_v8, %v483_v9 }
 0x2d8   :  { %v526_v11 = vsel %vm525_vm0, %v484_v10, -1e+30 }
 0x2d9   :  { %542 = vmax.xlane.f32.xlu0 %v526_v11 }
 0x2dd   :  { %v485_v12 = vpop.f32.mrf.mxu3 }
 0x2de   :  { %v1142_v15 = vadd.f32 %v1135_v8, %v485_v12 }
 0x2e0   :  { %v527_v20 = vsel %vm525_vm0, %v1142_v15, -1e+30 }
 0x2e1   :  { %544 = vmax.xlane.f32.xlu0 %v527_v20 }
 0x2e5   :  { %v488_v23 = vpop.f32.mrf.mxu3 }
 0x2e6   :  { %v1148_v27 = vadd.f32 %v1135_v8, %v488_v23 }
 0x2e8   :  { %v528_v28 = vsel %vm525_vm0, %v1148_v27, -1e+30 }
 0x2e9   :  { %546 = vmax.xlane.f32.xlu1 %v528_v28 }
 0x2ed   :  { %v490_v29 = vpop.f32.mrf.mxu3 }
 0x2ee   :  { %v1154_v30 = vadd.f32 %v1135_v8, %v490_v29 }
 0x2f0   :  { %v529_v31 = vsel %vm525_vm0, %v1154_v30, -1e+30 }
 0x2f1   :  { %548 = vmax.xlane.f32.xlu1 %v529_v31 }
 0x2f5   :  { %v493_v32 = vpop.f32.mrf.mxu3 }
 0x2f6   :  { %v1160_v33 = vadd.f32 %v1135_v8, %v493_v32 }
 0x2f8   :  { %v530_v34 = vsel %vm525_vm0, %v1160_v33, -1e+30 }
 0x2f9   :  { %550 = vmax.xlane.f32.xlu2 %v530_v34 }
 0x2fd   :  { %v495_v35 = vpop.f32.mrf.mxu3 }
 0x2fe   :  { %v1166_v36 = vadd.f32 %v1135_v8, %v495_v35 }
 0x300   :  { %v531_v37 = vsel %vm525_vm0, %v1166_v36, -1e+30 }
 0x301   :  { %552 = vmax.xlane.f32.xlu2 %v531_v37 }
 0x305   :  { %v498_v38 = vpop.f32.mrf.mxu3 }
 0x306   :  { %v1172_v39 = vadd.f32 %v1135_v8, %v498_v38 }
 0x308   :  { %v532_v40 = vsel %vm525_vm0, %v1172_v39, -1e+30 }
 0x309   :  { %554 = vmax.xlane.f32.xlu0 %v532_v40 }
 0x30d   :  { %v500_v41 = vpop.f32.mrf.mxu3 }
 0x30e   :  { %v1178_v42 = vadd.f32 %v1135_v8, %v500_v41 }
 0x310   :  { %v533_v43 = vsel %vm525_vm0, %v1178_v42, -1e+30 }
 0x311   :  { %556 = vmax.xlane.f32.xlu1 %v533_v43 }
 0x315   :  { %v503_v44 = vpop.f32.mrf.mxu3 }
 0x316   :  { %v1184_v45 = vadd.f32 %v1135_v8, %v503_v44 }
 0x318   :  { %v534_v46 = vsel %vm525_vm0, %v1184_v45, -1e+30 }
 0x319   :  { %558 = vmax.xlane.f32.xlu2 %v534_v46 }
 0x31d   :  { %v505_v47 = vpop.f32.mrf.mxu3 }
 0x31e   :  { %v1190_v48 = vadd.f32 %v1135_v8, %v505_v47 }
 0x320   :  { %v535_v49 = vsel %vm525_vm0, %v1190_v48, -1e+30 }
 0x321   :  { %560 = vmax.xlane.f32.xlu0 %v535_v49 }
 0x325   :  { %v508_v50 = vpop.f32.mrf.mxu3 }
 0x326   :  { %v1196_v51 = vadd.f32 %v1135_v8, %v508_v50 }
 0x328   :  { %v536_v52 = vsel %vm525_vm0, %v1196_v51, -1e+30 }
 0x329   :  { %562 = vmax.xlane.f32.xlu1 %v536_v52 }
 0x32d   :  { %v510_v53 = vpop.f32.mrf.mxu3 }
 0x32e   :  { %v1202_v54 = vadd.f32 %v1135_v8, %v510_v53 }
 0x330   :  { %v537_v55 = vsel %vm525_vm0, %v1202_v54, -1e+30 }
 0x331   :  { %564 = vmax.xlane.f32.xlu2 %v537_v55 }
 0x335   :  { %v513_v56 = vpop.f32.mrf.mxu3 }
 0x336   :  { %v1208_v58 = vadd.f32 %v1135_v8, %v513_v56 }
 0x338   :  { %v538_v59 = vsel %vm525_vm0, %v1208_v58, -1e+30 }
 0x339   :  { %566 = vmax.xlane.f32.xlu0 %v538_v59 }
 0x33d   :  { %v515_v60 = vpop.f32.mrf.mxu3 }
 0x33e   :  { %v1214_v61 = vadd.f32 %v1135_v8, %v515_v60 }
 0x340   :  { %v539_v62 = vsel %vm525_vm0, %v1214_v61, -1e+30 }
 0x341   :  { %568 = vmax.xlane.f32.xlu1 %v539_v62 }
 0x345   :  { %v518_v63 = vpop.f32.mrf.mxu3 }
 0x346   :  { %v1220_v0 = vadd.f32 %v1135_v8, %v518_v63 }
 0x348   :  { %v540_v1 = vsel %vm525_vm0, %v1220_v0, -1e+30 }
 0x349   :  { %570 = vmax.xlane.f32.xlu2 %v540_v1 }
 0x34c   :  { %v543_v2 = vpop.xlane.xlu0 %542 }
 0x34d   :  { %v1225_v3 = vsub.f32 %v484_v10, %v543_v2  ;;  %v520_v4 = vpop.f32.mrf.mxu3 }
 0x34e   :  { %v1228_v5 = vadd.f32 %v1135_v8, %v520_v4 }
 0x34f   :  { %v590_v6 = vsel %vm525_vm0, %v1225_v3, -1e+30 }
 0x350   :  { %v606_v7 = vmul.f32 1.442695, %v590_v6  ;;  %v541_v13 = vsel %vm525_vm0, %v1228_v5, -1e+30 }
 0x351   :  { %572 = vmax.xlane.f32.xlu0 %v541_v13 }
 0x352   :  { %900 = vpow2.f32 %v606_v7 }
 0x354   :  { %v545_v57 = vpop.xlane.xlu0 %544 }
 0x355   :  { %v1237_v14 = vsub.f32 %v1142_v15, %v545_v57 }
 0x357   :  { %v591_v16 = vsel %vm525_vm0, %v1237_v14, -1e+30 }
 0x358   :  { %v901_v17 = vpop.eup %900  ;;  %v608_v18 = vmul.f32 1.442695, %v591_v16 }
 0x359   :  { %638 = vadd.xlane.f32.xlu1 %v901_v17 }
 0x35a   :  { %902 = vpow2.f32 %v608_v18 }
 0x35c   :  { %v547_v19 = vpop.xlane.xlu1 %546 }
 0x35d   :  { %v1243_v21 = vsub.f32 %v1148_v27, %v547_v19 }
 0x35f   :  { %v592_v22 = vsel %vm525_vm0, %v1243_v21, -1e+30 }
 0x360   :  { %v903_v24 = vpop.eup %902  ;;  %v610_v25 = vmul.f32 1.442695, %v592_v22 }
 0x361   :  { %640 = vadd.xlane.f32.xlu2 %v903_v24 }
 0x362   :  { %904 = vpow2.f32 %v610_v25 }
 0x364   :  { %v549_v8 = vpop.xlane.xlu1 %548 }
 0x365   :  { %v1249_v9 = vsub.f32 %v1154_v30, %v549_v8 }
 0x367   :  { %v593_v10 = vsel %vm525_vm0, %v1249_v9, -1e+30 }
 0x368   :  { %v905_v11 = vpop.eup %904  ;;  %v612_v12 = vmul.f32 1.442695, %v593_v10 }
 0x369   :  { %642 = vadd.xlane.f32.xlu0 %v905_v11 }
 0x36a   :  { %906 = vpow2.f32 %v612_v12 }
 0x36c   :  { %v551_v15 = vpop.xlane.xlu2 %550 }
 0x36d   :  { %v1255_v20 = vsub.f32 %v1160_v33, %v551_v15 }
 0x36f   :  { %v594_v23 = vsel %vm525_vm0, %v1255_v20, -1e+30 }
 0x370   :  { %v907_v27 = vpop.eup %906  ;;  %v614_v28 = vmul.f32 1.442695, %v594_v23 }
 0x371   :  { %644 = vadd.xlane.f32.xlu1 %v907_v27 }
 0x372   :  { %908 = vpow2.f32 %v614_v28 }
 0x374   :  { %v553_v29 = vpop.xlane.xlu2 %552 }
 0x375   :  { %v1261_v30 = vsub.f32 %v1166_v36, %v553_v29 }
 0x377   :  { %v595_v31 = vsel %vm525_vm0, %v1261_v30, -1e+30 }
 0x378   :  { %v909_v32 = vpop.eup %908  ;;  %v616_v34 = vmul.f32 1.442695, %v595_v31 }
 0x379   :  { %646 = vadd.xlane.f32.xlu2 %v909_v32 }
 0x37a   :  { %910 = vpow2.f32 %v616_v34 }
 0x37c   :  { %v555_v33 = vpop.xlane.xlu0 %554 }
 0x37d   :  { %v1267_v35 = vsub.f32 %v1172_v39, %v555_v33 }
 0x37f   :  { %v596_v37 = vsel %vm525_vm0, %v1267_v35, -1e+30 }
 0x380   :  { %v911_v38 = vpop.eup %910  ;;  %v618_v40 = vmul.f32 1.442695, %v596_v37 }
 0x381   :  { %648 = vadd.xlane.f32.xlu0 %v911_v38 }
 0x382   :  { %912 = vpow2.f32 %v618_v40 }
 0x384   :  { %v557_v36 = vpop.xlane.xlu1 %556 }
 0x385   :  { %v1273_v41 = vsub.f32 %v1178_v42, %v557_v36 }
 0x387   :  { %v597_v43 = vsel %vm525_vm0, %v1273_v41, -1e+30 }
 0x388   :  { %v913_v44 = vpop.eup %912  ;;  %v620_v46 = vmul.f32 1.442695, %v597_v43 }
 0x389   :  { %650 = vadd.xlane.f32.xlu1 %v913_v44 }
 0x38a   :  { %914 = vpow2.f32 %v620_v46 }
 0x38c   :  { %v559_v39 = vpop.xlane.xlu2 %558 }
 0x38d   :  { %v1279_v47 = vsub.f32 %v1184_v45, %v559_v39 }
 0x38f   :  { %v598_v49 = vsel %vm525_vm0, %v1279_v47, -1e+30 }
 0x390   :  { %v915_v50 = vpop.eup %914  ;;  %v622_v52 = vmul.f32 1.442695, %v598_v49 }
 0x391   :  { %652 = vadd.xlane.f32.xlu2 %v915_v50 }
 0x392   :  { %916 = vpow2.f32 %v622_v52 }
 0x394   :  { %v561_v42 = vpop.xlane.xlu0 %560 }
 0x395   :  { %v1285_v53 = vsub.f32 %v1190_v48, %v561_v42 }
 0x397   :  { %v599_v55 = vsel %vm525_vm0, %v1285_v53, -1e+30 }
 0x398   :  { %v917_v56 = vpop.eup %916  ;;  %v624_v59 = vmul.f32 1.442695, %v599_v55 }
 0x399   :  { %654 = vadd.xlane.f32.xlu0 %v917_v56 }
 0x39a   :  { %918 = vpow2.f32 %v624_v59 }
 0x39c   :  { %v563_v45 = vpop.xlane.xlu1 %562 }
 0x39d   :  { %v1291_v60 = vsub.f32 %v1196_v51, %v563_v45 }
 0x39f   :  { %v600_v62 = vsel %vm525_vm0, %v1291_v60, -1e+30 }
 0x3a0   :  { %v919_v63 = vpop.eup %918  ;;  %v626_v1 = vmul.f32 1.442695, %v600_v62 }
 0x3a1   :  { %656 = vadd.xlane.f32.xlu1 %v919_v63 }
 0x3a2   :  { %920 = vpow2.f32 %v626_v1 }
 0x3a4   :  { %v565_v48 = vpop.xlane.xlu2 %564 }
 0x3a5   :  { %v1297_v2 = vsub.f32 %v1202_v54, %v565_v48 }
 0x3a7   :  { %v601_v4 = vsel %vm525_vm0, %v1297_v2, -1e+30 }
 0x3a8   :  { %v921_v6 = vpop.eup %920  ;;  %v628_v7 = vmul.f32 1.442695, %v601_v4 }
 0x3a9   :  { %658 = vadd.xlane.f32.xlu2 %v921_v6 }
 0x3aa   :  { %922 = vpow2.f32 %v628_v7 }
 0x3ac   :  { %v567_v51 = vpop.xlane.xlu0 %566 }
 0x3ad   :  { %v1303_v13 = vsub.f32 %v1208_v58, %v567_v51 }
 0x3af   :  { %v602_v57 = vsel %vm525_vm0, %v1303_v13, -1e+30 }
 0x3b0   :  { %v923_v16 = vpop.eup %922  ;;  %v630_v17 = vmul.f32 1.442695, %v602_v57 }
 0x3b1   :  { %660 = vadd.xlane.f32.xlu0 %v923_v16 }
 0x3b2   :  { %924 = vpow2.f32 %v630_v17 }
 0x3b4   :  { %v569_v54 = vpop.xlane.xlu1 %568 }
 0x3b5   :  { %v1309_v18 = vsub.f32 %v1214_v61, %v569_v54 }
 0x3b7   :  { %v603_v19 = vsel %vm525_vm0, %v1309_v18, -1e+30 }
 0x3b8   :  { %v925_v22 = vpop.eup %924  ;;  %v632_v24 = vmul.f32 1.442695, %v603_v19 }
 0x3b9   :  { %662 = vadd.xlane.f32.xlu1 %v925_v22 }
 0x3ba   :  { %926 = vpow2.f32 %v632_v24 }
 0x3bc   :  { %v571_v58 = vpop.xlane.xlu2 %570 }
 0x3bd   :  { %v1315_v25 = vsub.f32 %v1220_v0, %v571_v58 }
 0x3bf   :  { %v604_v8 = vsel %vm525_vm0, %v1315_v25, -1e+30 }
 0x3c0   :  { %v927_v10 = vpop.eup %926  ;;  %v634_v11 = vmul.f32 1.442695, %v604_v8 }
 0x3c1   :  { %664 = vadd.xlane.f32.xlu2 %v927_v10 }
 0x3c2   :  { %928 = vpow2.f32 %v634_v11 }
 0x3c4   :  { %v573_v61 = vpop.xlane.xlu0 %572 }
 0x3c5   :  { %v1321_v12 = vsub.f32 %v1228_v5, %v573_v61 }
 0x3c7   :  { %v605_v15 = vsel %vm525_vm0, %v1321_v12, -1e+30 }
 0x3c8   :  { %v929_v23 = vpop.eup %928  ;;  %v636_v27 = vmul.f32 1.442695, %v605_v15 }
 0x3c9   :  { %666 = vadd.xlane.f32.xlu0 %v929_v23 }
 0x3ca   :  { %930 = vpow2.f32 %v636_v27 }
 0x3cc   :  { %v639_v0 = vpop.xlane.xlu1 %638 }
 0x3cd   :  { %932 = vlog2.f32 %v639_v0 }
 0x3d0   :  { %v931_v28 = vpop.eup %930 }
 0x3d1   :  { %668 = vadd.xlane.f32.xlu1 %v931_v28 }
 0x3d3   :  { %v933_v29 = vpop.eup %932 }
 0x3d4   :  { %v671_v31 = vmul.f32 0.6931472, %v933_v29  ;;  %v641_v32 = vpop.xlane.xlu2 %640 }
 0x3d5   :  { %934 = vlog2.f32 %v641_v32 }
 0x3d6   :  { %v702_v34 = vsub.f32 %v1225_v3, %v671_v31 }
 0x3d8   :  { %718 = vst [vmem:[%s1396_s6] sm:$0xff] %v702_v34 }
 0x3db   :  { %v935_v26 = vpop.eup %934 }
 0x3dc   :  { %v673_v5 = vmul.f32 0.6931472, %v935_v26  ;;  %v643_v33 = vpop.xlane.xlu0 %642 }
 0x3dd   :  { %936 = vlog2.f32 %v643_v33 }
 0x3de   :  { %v703_v37 = vsub.f32 %v1237_v14, %v673_v5 }
 0x3e0   :  { %719 = vst [vmem:[%s1396_s6 + $0x8] sm:$0xff] %v703_v37 }
 0x3e3   :  { %v937_v38 = vpop.eup %936 }
 0x3e4   :  { %v675_v40 = vmul.f32 0.6931472, %v937_v38  ;;  %v645_v36 = vpop.xlane.xlu1 %644 }
 0x3e5   :  { %938 = vlog2.f32 %v645_v36 }
 0x3e6   :  { %v704_v3 = vsub.f32 %v1243_v21, %v675_v40 }
 0x3e8   :  { %720 = vst [vmem:[%s1396_s6 + $0x10] sm:$0xff] %v704_v3 }
 0x3eb   :  { %v939_v43 = vpop.eup %938 }
 0x3ec   :  { %v677_v44 = vmul.f32 0.6931472, %v939_v43  ;;  %v647_v46 = vpop.xlane.xlu2 %646 }
 0x3ed   :  { %940 = vlog2.f32 %v647_v46 }
 0x3ee   :  { %v705_v14 = vsub.f32 %v1249_v9, %v677_v44 }
 0x3f0   :  { %721 = vst [vmem:[%s1396_s6 + $0x18] sm:$0xff] %v705_v14 }
 0x3f3   :  { %v941_v39 = vpop.eup %940 }
 0x3f4   :  { %v679_v49 = vmul.f32 0.6931472, %v941_v39  ;;  %v649_v50 = vpop.xlane.xlu0 %648 }
 0x3f5   :  { %942 = vlog2.f32 %v649_v50 }
 0x3f6   :  { %v706_v21 = vsub.f32 %v1255_v20, %v679_v49 }
 0x3f8   :  { %722 = vst [vmem:[%s1396_s6 + $0x20] sm:$0xff] %v706_v21 }
 0x3fb   :  { %v943_v52 = vpop.eup %942 }
 0x3fc   :  { %v681_v42 = vmul.f32 0.6931472, %v943_v52  ;;  %v651_v55 = vpop.xlane.xlu1 %650 }
 0x3fd   :  { %944 = vlog2.f32 %v651_v55 }
 0x3fe   :  { %v707_v9 = vsub.f32 %v1261_v30, %v681_v42 }
 0x400   :  { %723 = vst [vmem:[%s1396_s6 + $0x28] sm:$0xff] %v707_v9 }
 0x403   :  { %v945_v56 = vpop.eup %944 }
 0x404   :  { %v683_v59 = vmul.f32 0.6931472, %v945_v56  ;;  %v653_v45 = vpop.xlane.xlu2 %652 }
 0x405   :  { %946 = vlog2.f32 %v653_v45 }
 0x406   :  { %v708_v20 = vsub.f32 %v1267_v35, %v683_v59 }
 0x408   :  { %724 = vst [vmem:[%s1396_s6 + $0x30] sm:$0xff] %v708_v20 }
 0x40b   :  { %v947_v62 = vpop.eup %946 }
 0x40c   :  { %v685_v63 = vmul.f32 0.6931472, %v947_v62  ;;  %v655_v1 = vpop.xlane.xlu0 %654 }
 0x40d   :  { %948 = vlog2.f32 %v655_v1 }
 0x40e   :  { %v709_v30 = vsub.f32 %v1273_v41, %v685_v63 }
 0x410   :  { %725 = vst [vmem:[%s1396_s6 + $0x38] sm:$0xff] %v709_v30 }
 0x413   :  { %v949_v48 = vpop.eup %948 }
 0x414   :  { %v687_v4 = vmul.f32 0.6931472, %v949_v48  ;;  %v657_v6 = vpop.xlane.xlu1 %656 }
 0x415   :  { %950 = vlog2.f32 %v657_v6 }
 0x416   :  { %v710_v35 = vsub.f32 %v1279_v47, %v687_v4 }
 0x418   :  { %726 = vst [vmem:[%s1396_s6 + $0x40] sm:$0xff] %v710_v35 }
 0x41b   :  { %v951_v7 = vpop.eup %950 }
 0x41c   :  { %v689_v51 = vmul.f32 0.6931472, %v951_v7  ;;  %v659_v57 = vpop.xlane.xlu2 %658 }
 0x41d   :  { %952 = vlog2.f32 %v659_v57 }
 0x41e   :  { %v711_v41 = vsub.f32 %v1285_v53, %v689_v51 }
 0x420   :  { %727 = vst [vmem:[%s1396_s6 + $0x48] sm:$0xff] %v711_v41 }
 0x423   :  { %v953_v16 = vpop.eup %952 }
 0x424   :  { %v691_v17 = vmul.f32 0.6931472, %v953_v16  ;;  %v661_v54 = vpop.xlane.xlu0 %660 }
 0x425   :  { %954 = vlog2.f32 %v661_v54 }
 0x426   :  { %v712_v47 = vsub.f32 %v1291_v60, %v691_v17 }
 0x428   :  { %728 = vst [vmem:[%s1396_s6 + $0x50] sm:$0xff] %v712_v47 }
 0x42b   :  { %v955_v19 = vpop.eup %954 }
 0x42c   :  { %v693_v22 = vmul.f32 0.6931472, %v955_v19  ;;  %v663_v24 = vpop.xlane.xlu1 %662 }
 0x42d   :  { %956 = vlog2.f32 %v663_v24 }
 0x42e   :  { %v713_v53 = vsub.f32 %v1297_v2, %v693_v22 }
 0x430   :  { %729 = vst [vmem:[%s1396_s6 + $0x58] sm:$0xff] %v713_v53 }
 0x433   :  { %v957_v58 = vpop.eup %956 }
 0x434   :  { %v695_v8 = vmul.f32 0.6931472, %v957_v58  ;;  %v665_v10 = vpop.xlane.xlu2 %664 }
 0x435   :  { %958 = vlog2.f32 %v665_v10 }
 0x436   :  { %v714_v60 = vsub.f32 %v1303_v13, %v695_v8 }
 0x438   :  { %730 = vst [vmem:[%s1396_s6 + $0x60] sm:$0xff] %v714_v60 }
 0x43b   :  { %v959_v11 = vpop.eup %958 }
 0x43c   :  { %v697_v61 = vmul.f32 0.6931472, %v959_v11  ;;  %v667_v15 = vpop.xlane.xlu0 %666 }
 0x43d   :  { %960 = vlog2.f32 %v667_v15 }
 0x43e   :  { %v715_v2 = vsub.f32 %v1309_v18, %v697_v61 }
 0x440   :  { %731 = vst [vmem:[%s1396_s6 + $0x68] sm:$0xff] %v715_v2 }
 0x443   :  { %v961_v23 = vpop.eup %960 }
 0x444   :  { %v699_v27 = vmul.f32 0.6931472, %v961_v23  ;;  %v669_v0 = vpop.xlane.xlu1 %668 }
 0x445   :  { %962 = vlog2.f32 %v669_v0 }
 0x446   :  { %v716_v13 = vsub.f32 %v1315_v25, %v699_v27 }
 0x448   :  { %732 = vst [vmem:[%s1396_s6 + $0x70] sm:$0xff] %v716_v13 }
 0x44b   :  { %v963_v28 = vpop.eup %962 }
 0x44c   :  { %v701_v29 = vmul.f32 0.6931472, %v963_v28 }
 0x44e   :  { %v717_v31 = vsub.f32 %v1321_v12, %v701_v29 }
 0x450   :  { %733 = vst [vmem:[%s1396_s6 + $0x78] sm:$0xff] %v717_v31 }

</bundles_post_ra>
